<compile_context>
chip_gen: v7x
topology: tpu7x:2x2x1
jax: 0.10.0
libtpu: 0.0.40
codegen_flags: <defaults>
</compile_context>

<pallas_src>
import functools

import jax
import jax.numpy as jnp
from jax.experimental import pallas as pl
from jax.experimental.pallas import tpu as pltpu


def _decoder_kernel(x_ref, wat_ref, wfct_ref, p_ref, o_ref, *, T, B, H, V):
    # x_ref:    (B*T, H)  batch-major rows (row b*T + t  ==  x[t, b, :])
    # wat_ref:  (H, H)    attention Linear weight, pre-transposed (y = x @ waT)
    # wfct_ref: (H, V)    fc weight, pre-transposed
    # p_ref:    (3, 128)  packed small params: rows = [ba | v | bfc], zero-padded lanes
    # o_ref:    (B*T, V)  log-probabilities, batch-major rows
    xf = x_ref[...]                                   # (B*T, H)
    waT = wat_ref[...]                                # (H, H)
    wfcT = wfct_ref[...]                              # (H, V)
    p = p_ref[...]                                    # (3, 128)
    ba = p[0:1, :H]                                   # (1, H)
    v_row = p[1:2, :H]                                # (1, H)
    bfc = p[2:3, :V]                                  # (1, V)

    # Attention pre-activation, shared by every prefix and every batch element (one matmul).
    z = jnp.tanh(jnp.dot(xf, waT, preferred_element_type=jnp.float32) + ba)   # (B*T, H)

    # Lower-triangular prefix mask: row = prefix index (t_out), col = time (t_in).
    t_out = jax.lax.broadcasted_iota(jnp.int32, (T, T), 0)
    t_in = jax.lax.broadcasted_iota(jnp.int32, (T, T), 1)
    valid = t_in <= t_out                             # (T, T)
    neg = jnp.float32(-1e30)

    logits_list = []
    for b in range(B):                                # B is tiny & static: unrolled
        rows = slice(b * T, (b + 1) * T)              # tile-aligned sublane slice (T == 8)
        x_b = xf[rows, :]                             # (T, H)
        z_b = z[rows, :]                              # (T, H)

        # Scores along lanes: s_row[0, t] = z_b[t, :] . v   (MXU matvec, trans_b form)
        s_row = jax.lax.dot_general(
            v_row, z_b, (((1,), (1,)), ((), ())),
            preferred_element_type=jnp.float32)       # (1, T)

        # Masked per-prefix log-softmax; reductions are lane reductions.
        sm = jnp.where(valid, s_row, neg)             # (T_out, T_in)
        m = jnp.max(sm, axis=1, keepdims=True)        # (T, 1)
        e = jnp.where(valid, jnp.exp(sm - m), jnp.float32(0.0))
        denom = jnp.sum(e, axis=1, keepdims=True)     # (T, 1)
        # NOTE: the torch module uses the *log*-softmax values directly as weights.
        w = jnp.where(valid, sm - m - jnp.log(denom), jnp.float32(0.0))       # (T, T)

        # ctx_b[t_out, h] = sum_t w[t_out, t] * x_b[t, h]   (MXU)
        ctx_b = jnp.dot(w, x_b, preferred_element_type=jnp.float32)           # (T, H)

        logits_list.append(
            jnp.dot(ctx_b, wfcT, preferred_element_type=jnp.float32) + bfc)   # (T, V)

    # log_softmax over the BATCH dim (torch dim=1): elementwise across the B slabs.
    m_all = logits_list[0]
    for lb in logits_list[1:]:
        m_all = jnp.maximum(m_all, lb)
    esum = jnp.exp(logits_list[0] - m_all)
    for lb in logits_list[1:]:
        esum = esum + jnp.exp(lb - m_all)
    lse = m_all + jnp.log(esum)                       # (T, V)

    out = jnp.concatenate([lb - lse for lb in logits_list], axis=0)           # (B*T, V)
    o_ref[...] = out.astype(o_ref.dtype)              # single lane-dense store


def my_decoder_forward(x, wa, ba, v, wfc, bfc):
    """x: (T, B, H) f32; returns (T, B, V) f32 (log-probabilities over the batch dim)."""
    T, B, H = x.shape
    V = wfc.shape[0]
    LANE = 128
    assert H <= LANE and V <= LANE, "packed-param path assumes H, V <= 128"

    # All layout plumbing happens here in XLA (outside the kernel):
    waT = jnp.asarray(wa, jnp.float32).T              # (H, H)
    wfcT = jnp.asarray(wfc, jnp.float32).T            # (H, V)
    params = jnp.zeros((3, LANE), dtype=jnp.float32)
    params = params.at[0, :H].set(ba.astype(jnp.float32))
    params = params.at[1, :H].set(v.astype(jnp.float32))
    params = params.at[2, :V].set(bfc.astype(jnp.float32))
    xf = jnp.transpose(x.astype(jnp.float32), (1, 0, 2)).reshape(B * T, H)   # batch-major

    kernel = functools.partial(_decoder_kernel, T=T, B=B, H=H, V=V)

    # Single program, no grid: every operand is tiny and lives as a whole-array VMEM block.
    # TODO(synk): for production sizes, add a leading "parallel" grid axis over sequences
    # (dimension_semantics=("parallel",)) so v7x's two TensorCores are both used, and size
    # tiles for the 64 MiB v7x VMEM.
    out_flat = pl.pallas_call(
        kernel,
        out_shape=jax.ShapeDtypeStruct((B * T, V), jnp.float32),
        in_specs=[pl.BlockSpec(memory_space=pltpu.MemorySpace.VMEM)] * 4,
        out_specs=pl.BlockSpec(memory_space=pltpu.MemorySpace.VMEM),
    )(xf, waT, wfcT, params)

    return out_flat.reshape(B, T, V).transpose(1, 0, 2)   # (T, B, V)


def ref_forward(x, wa, ba, v, wfc, bfc):
    """Pure-JAX reference mirroring the PyTorch module."""
    T, B, H = x.shape
    ctxs = []
    for i in range(1, T + 1):
        xp = x[:i]                                     # (i, B, H)
        z = jnp.tanh(xp @ wa.T + ba)                   # (i, B, H)
        s = jnp.einsum("tbh,h->bt", z, v)              # (B, i)
        a = jax.nn.log_softmax(s, axis=1)              # (B, i)
        ctxs.append(jnp.einsum("bt,tbh->bh", a, xp))   # (B, H)
    ctx = jnp.stack(ctxs, axis=0)                      # (T, B, H)
    logits = ctx @ wfc.T + bfc                         # (T, B, V)
    return jax.nn.log_softmax(logits, axis=1)          # softmax over the batch dim (torch dim=1)


if __name__ == "__main__":
    T, B, H, V = 8, 2, 32, 16

    key = jax.random.PRNGKey(0)
    kx, kw, kb, kwa, kba, kv = jax.random.split(key, 6)

    x = jax.random.normal(kx, (T, B, H), dtype=jnp.float32)

    # fc keeps a non-zero (deterministic) init.
    wfc = jax.random.normal(kw, (V, H), dtype=jnp.float32) * (1.0 / jnp.sqrt(H))
    bfc = jax.random.normal(kb, (V,), dtype=jnp.float32) * 0.1

    # Case 1: faithful to MyAttention.init_weights (all attention params zeroed).
    wa0 = jnp.zeros((H, H), dtype=jnp.float32)
    ba0 = jnp.zeros((H,), dtype=jnp.float32)
    v0 = jnp.zeros((H,), dtype=jnp.float32)

    out0 = jax.block_until_ready(my_decoder_forward(x, wa0, ba0, v0, wfc, bfc))
    ref0 = ref_forward(x, wa0, ba0, v0, wfc, bfc)
    assert out0.shape == (T, B, V)
    assert jnp.allclose(out0, ref0, atol=1e-4, rtol=1e-4), "mismatch (zero-init attention)"

    # Case 2: non-zero attention params to exercise the full attention path.
    wa1 = jax.random.normal(kwa, (H, H), dtype=jnp.float32) * (1.0 / jnp.sqrt(H))
    ba1 = jax.random.normal(kba, (H,), dtype=jnp.float32) * 0.1
    v1 = jax.random.normal(kv, (H,), dtype=jnp.float32)

    out1 = jax.block_until_ready(my_decoder_forward(x, wa1, ba1, v1, wfc, bfc))
    ref1 = ref_forward(x, wa1, ba1, v1, wfc, bfc)
    assert jnp.allclose(out1, ref1, atol=1e-4, rtol=1e-4), "mismatch (random attention)"

    print("KERNEL_OK")
</pallas_src>

<mosaic_0001>
module attributes {stable_mosaic.version = 11 : i64} {
  func.func @_decoder_kernel(%arg0: memref<16x32xf32, #tpu.memory_space<vmem>>, %arg1: memref<32x32xf32, #tpu.memory_space<vmem>>, %arg2: memref<32x16xf32, #tpu.memory_space<vmem>>, %arg3: memref<3x128xf32, #tpu.memory_space<vmem>>, %arg4: memref<16x16xf32, #tpu.memory_space<vmem>>) attributes {dimension_semantics = [], scalar_prefetch = 0 : i64, scratch_operands = 0 : i64, tpu.core_type = #tpu.core_type<tc>} {
    %c0 = arith.constant 0 : index
    %c0_0 = arith.constant 0 : index
    %0 = vector.load %arg0[%c0, %c0_0] : memref<16x32xf32, #tpu.memory_space<vmem>>, vector<16x32xf32>
    %c0_1 = arith.constant 0 : index
    %c0_2 = arith.constant 0 : index
    %1 = vector.load %arg1[%c0_1, %c0_2] : memref<32x32xf32, #tpu.memory_space<vmem>>, vector<32x32xf32>
    %c0_3 = arith.constant 0 : index
    %c0_4 = arith.constant 0 : index
    %2 = vector.load %arg2[%c0_3, %c0_4] : memref<32x16xf32, #tpu.memory_space<vmem>>, vector<32x16xf32>
    %c0_5 = arith.constant 0 : index
    %c0_6 = arith.constant 0 : index
    %3 = vector.load %arg3[%c0_5, %c0_6] : memref<3x128xf32, #tpu.memory_space<vmem>>, vector<3x128xf32>
    %4 = vector.extract_strided_slice %3 {offsets = [0, 0], sizes = [1, 32], strides = [1, 1]} : vector<3x128xf32> to vector<1x32xf32>
    %5 = vector.extract_strided_slice %3 {offsets = [1, 0], sizes = [1, 32], strides = [1, 1]} : vector<3x128xf32> to vector<1x32xf32>
    %6 = vector.extract_strided_slice %3 {offsets = [2, 0], sizes = [1, 16], strides = [1, 1]} : vector<3x128xf32> to vector<1x16xf32>
    %cst = arith.constant dense<0.000000e+00> : vector<16x32xf32>
    %7 = tpu.matmul %0, %1, %cst {dimension_numbers = #tpu.dot_dimension_numbers<[1], [0], [0], [1], [0, 0, 1, 1], [], []>} : vector<16x32xf32>, vector<32x32xf32>, vector<16x32xf32> -> vector<16x32xf32>
    %8 = vector.broadcast %4 : vector<1x32xf32> to vector<16x32xf32>
    %9 = arith.addf %7, %8 : vector<16x32xf32>
    %10 = math.tanh %9 : vector<16x32xf32>
    %11 = tpu.iota {dimensions = array<i32: 0>} : vector<8x8xi32>
    %12 = tpu.iota {dimensions = array<i32: 1>} : vector<8x8xi32>
    %13 = arith.cmpi sle, %12, %11 : vector<8x8xi32>
    %14 = vector.extract_strided_slice %0 {offsets = [0, 0], sizes = [8, 32], strides = [1, 1]} : vector<16x32xf32> to vector<8x32xf32>
    %15 = vector.extract_strided_slice %10 {offsets = [0, 0], sizes = [8, 32], strides = [1, 1]} : vector<16x32xf32> to vector<8x32xf32>
    %cst_7 = arith.constant dense<0.000000e+00> : vector<1x8xf32>
    %16 = tpu.matmul %5, %15, %cst_7 {dimension_numbers = #tpu.dot_dimension_numbers<[1], [1], [0], [0], [0, 0, 1, 0], [], []>} : vector<1x32xf32>, vector<8x32xf32>, vector<1x8xf32> -> vector<1x8xf32>
    %cst_8 = arith.constant -1.000000e+30 : f32
    %17 = vector.shape_cast %16 : vector<1x8xf32> to vector<1x8xf32>
    %18 = vector.broadcast %17 : vector<1x8xf32> to vector<8x8xf32>
    %19 = vector.broadcast %cst_8 : f32 to vector<8x8xf32>
    %20 = arith.select %13, %18, %19 : vector<8x8xi1>, vector<8x8xf32>
    %cst_9 = arith.constant dense<0xFF800000> : vector<8xf32>
    %21 = vector.multi_reduction <maximumf>, %20, %cst_9 [1] : vector<8x8xf32> to vector<8xf32>
    %22 = vector.shape_cast %21 : vector<8xf32> to vector<8x1xf32>
    %23 = vector.broadcast %22 : vector<8x1xf32> to vector<8x8xf32>
    %24 = arith.subf %20, %23 : vector<8x8xf32>
    %25 = math.exp %24 : vector<8x8xf32>
    %cst_10 = arith.constant 0.000000e+00 : f32
    %26 = vector.broadcast %cst_10 : f32 to vector<8x8xf32>
    %27 = arith.select %13, %25, %26 : vector<8x8xi1>, vector<8x8xf32>
    %cst_11 = arith.constant dense<0.000000e+00> : vector<8xf32>
    %28 = vector.multi_reduction <add>, %27, %cst_11 [1] : vector<8x8xf32> to vector<8xf32>
    %29 = vector.shape_cast %28 : vector<8xf32> to vector<8x1xf32>
    %30 = vector.broadcast %22 : vector<8x1xf32> to vector<8x8xf32>
    %31 = arith.subf %20, %30 : vector<8x8xf32>
    %32 = math.log %29 : vector<8x1xf32>
    %33 = vector.broadcast %32 : vector<8x1xf32> to vector<8x8xf32>
    %34 = arith.subf %31, %33 : vector<8x8xf32>
    %cst_12 = arith.constant 0.000000e+00 : f32
    %35 = vector.broadcast %cst_12 : f32 to vector<8x8xf32>
    %36 = arith.select %13, %34, %35 : vector<8x8xi1>, vector<8x8xf32>
    %cst_13 = arith.constant dense<0.000000e+00> : vector<8x32xf32>
    %37 = tpu.matmul %36, %14, %cst_13 {dimension_numbers = #tpu.dot_dimension_numbers<[1], [0], [0], [1], [0, 0, 1, 1], [], []>} : vector<8x8xf32>, vector<8x32xf32>, vector<8x32xf32> -> vector<8x32xf32>
    %cst_14 = arith.constant dense<0.000000e+00> : vector<8x16xf32>
    %38 = tpu.matmul %37, %2, %cst_14 {dimension_numbers = #tpu.dot_dimension_numbers<[1], [0], [0], [1], [0, 0, 1, 1], [], []>} : vector<8x32xf32>, vector<32x16xf32>, vector<8x16xf32> -> vector<8x16xf32>
    %39 = vector.broadcast %6 : vector<1x16xf32> to vector<8x16xf32>
    %40 = arith.addf %38, %39 : vector<8x16xf32>
    %41 = vector.extract_strided_slice %0 {offsets = [8, 0], sizes = [8, 32], strides = [1, 1]} : vector<16x32xf32> to vector<8x32xf32>
    %42 = vector.extract_strided_slice %10 {offsets = [8, 0], sizes = [8, 32], strides = [1, 1]} : vector<16x32xf32> to vector<8x32xf32>
    %cst_15 = arith.constant dense<0.000000e+00> : vector<1x8xf32>
    %43 = tpu.matmul %5, %42, %cst_15 {dimension_numbers = #tpu.dot_dimension_numbers<[1], [1], [0], [0], [0, 0, 1, 0], [], []>} : vector<1x32xf32>, vector<8x32xf32>, vector<1x8xf32> -> vector<1x8xf32>
    %cst_16 = arith.constant -1.000000e+30 : f32
    %44 = vector.shape_cast %43 : vector<1x8xf32> to vector<1x8xf32>
    %45 = vector.broadcast %44 : vector<1x8xf32> to vector<8x8xf32>
    %46 = vector.broadcast %cst_16 : f32 to vector<8x8xf32>
    %47 = arith.select %13, %45, %46 : vector<8x8xi1>, vector<8x8xf32>
    %cst_17 = arith.constant dense<0xFF800000> : vector<8xf32>
    %48 = vector.multi_reduction <maximumf>, %47, %cst_17 [1] : vector<8x8xf32> to vector<8xf32>
    %49 = vector.shape_cast %48 : vector<8xf32> to vector<8x1xf32>
    %50 = vector.broadcast %49 : vector<8x1xf32> to vector<8x8xf32>
    %51 = arith.subf %47, %50 : vector<8x8xf32>
    %52 = math.exp %51 : vector<8x8xf32>
    %cst_18 = arith.constant 0.000000e+00 : f32
    %53 = vector.broadcast %cst_18 : f32 to vector<8x8xf32>
    %54 = arith.select %13, %52, %53 : vector<8x8xi1>, vector<8x8xf32>
    %cst_19 = arith.constant dense<0.000000e+00> : vector<8xf32>
    %55 = vector.multi_reduction <add>, %54, %cst_19 [1] : vector<8x8xf32> to vector<8xf32>
    %56 = vector.shape_cast %55 : vector<8xf32> to vector<8x1xf32>
    %57 = vector.broadcast %49 : vector<8x1xf32> to vector<8x8xf32>
    %58 = arith.subf %47, %57 : vector<8x8xf32>
    %59 = math.log %56 : vector<8x1xf32>
    %60 = vector.broadcast %59 : vector<8x1xf32> to vector<8x8xf32>
    %61 = arith.subf %58, %60 : vector<8x8xf32>
    %cst_20 = arith.constant 0.000000e+00 : f32
    %62 = vector.broadcast %cst_20 : f32 to vector<8x8xf32>
    %63 = arith.select %13, %61, %62 : vector<8x8xi1>, vector<8x8xf32>
    %cst_21 = arith.constant dense<0.000000e+00> : vector<8x32xf32>
    %64 = tpu.matmul %63, %41, %cst_21 {dimension_numbers = #tpu.dot_dimension_numbers<[1], [0], [0], [1], [0, 0, 1, 1], [], []>} : vector<8x8xf32>, vector<8x32xf32>, vector<8x32xf32> -> vector<8x32xf32>
    %cst_22 = arith.constant dense<0.000000e+00> : vector<8x16xf32>
    %65 = tpu.matmul %64, %2, %cst_22 {dimension_numbers = #tpu.dot_dimension_numbers<[1], [0], [0], [1], [0, 0, 1, 1], [], []>} : vector<8x32xf32>, vector<32x16xf32>, vector<8x16xf32> -> vector<8x16xf32>
    %66 = vector.broadcast %6 : vector<1x16xf32> to vector<8x16xf32>
    %67 = arith.addf %65, %66 : vector<8x16xf32>
    %68 = arith.maximumf %40, %67 : vector<8x16xf32>
    %69 = arith.subf %40, %68 : vector<8x16xf32>
    %70 = math.exp %69 : vector<8x16xf32>
    %71 = arith.subf %67, %68 : vector<8x16xf32>
    %72 = math.exp %71 : vector<8x16xf32>
    %73 = arith.addf %70, %72 : vector<8x16xf32>
    %74 = math.log %73 : vector<8x16xf32>
    %75 = arith.addf %68, %74 : vector<8x16xf32>
    %76 = arith.subf %40, %75 : vector<8x16xf32>
    %77 = arith.subf %67, %75 : vector<8x16xf32>
    %78 = tpu.concatenate %76, %77 in 0 : vector<8x16xf32>, vector<8x16xf32> -> vector<16x16xf32>
    %c0_23 = arith.constant 0 : index
    %c0_24 = arith.constant 0 : index
    %79 = vector.load %arg4[%c0_23, %c0_24] : memref<16x16xf32, #tpu.memory_space<vmem>>, vector<16x16xf32>
    tpu.vector_store %arg4[%c0_23, %c0_24], %78 {strides = array<i32>} : memref<16x16xf32, #tpu.memory_space<vmem>>, vector<16x16xf32>,
    return
  }
}

</mosaic_0001>

<bundles_post_ra>
// kernel: tpu_custom_call.1
= control target key start
LH: loop header
LB: loop body
LE: loop exit
PB: predicated region body
PF: predicated region fallthrough
CT: control target
= control target key end

     0   :  { %vm33_vm0 = vcmask 261120   ;;  %s935_s0 = inlined_call_operand.vmem [shape: f32[16,32], index: 0, kind: input, shape index: {}]   ;;  %s936_s1 = inlined_call_operand.vmem [shape: f32[32,32], index: 1, kind: input, shape index: {}]   ;;  %s937_s2 = inlined_call_operand.vmem [shape: f32[32,16], index: 2, kind: input, shape index: {}]   ;;  %s938_s3 = inlined_call_operand.vmem [shape: f32[3,128], index: 3, kind: input, shape index: {}]   ;;  %s939_s4 = inlined_call_operand.hbm [shape: f32[16,16], index: 4, kind: output, shape index: {}]  }
   0x1   :  { %v20_v0 = vld [vmem:[%s936_s1] sm:$0xff]  ;;  %v21_v1 = vld [vmem:[%s936_s1 + $0x8] sm:$0xff]  ;;  %v22_v2 = vld [vmem:[%s936_s1 + $0x10] sm:$0xff] }
   0x2   :  { %v726_v3 = vpack.c.bf16 %v21_v1, %v20_v0  ;;  %v23_v4 = vld [vmem:[%s936_s1 + $0x18] sm:$0xff]  ;;  %v18_v5 = vld [vmem:[%s935_s0] sm:$0xff] }
   0x3   :  { %v730_v6 = vpack.c.bf16 %v23_v4, %v22_v2  ;;  %681 = vmatprep.mubr.msk.f32.mxu0 %vm33_vm0, %v18_v5 }
   0x4   :  { %9 = vsyncpa [#allocation3], 0  ;;  %727 = vmatprep.subr.bf16.mxu0 %v726_v3  ;;  %v844_v7 = vld [vmem:[%s935_s0 + $0x8] sm:$0xff]  ;;  %v794_v8 = vmov 0.0   ;;  %vm795_vm1 = vmmov 0   ;;  %v29_v9 = vlaneseq  ;;  %vm204_vm3 = vcmask 64512  }
   0x5   :  { %729 = vmatpush3.bf16.msra.mxu0 %v726_v3  ;;  %684 = vmatprep.subr.mxu1 %v794_v8  ;;  %v861_v12 = vld [vmem:[%s938_s3] sm:$0x7]  ;;  %v25_v34 = vld [vmem:[%s937_s2 + $0x8] sm:$0xff]  ;;  %v26_v35 = vld [vmem:[%s937_s2 + $0x10] sm:$0xff]  ;;  %v796_v36 = vmov 0.0|0.0   ;;  %vm620_vm4 = vcmask 130048  }
   0x6   :  { %731 = vmatprep.subr.bf16.mxu0 %v730_v6  ;;  %686 = vmatprep.mubr.msk.f32.mxu1 %vm795_vm1, %v794_v8  ;;  %v853_v10 = vshrl.u32 %v29_v9, 7  ;;  %v123_v19 = vrot.slane %v861_v12, 1  ;;  %v120_v20 = vand.u32 127, %v29_v9  ;;  %v24_v33 = vld [vmem:[%s937_s2] sm:$0xff]  ;;  %v27_v38 = vld [vmem:[%s937_s2 + $0x18] sm:$0xff]  ;;  %s797_s2 = smov [#allocation2]  }
   0x7   :  { %v735_v37 = vpack.c.bf16 %v25_v34, %v24_v33  ;;  %v738_v39 = vpack.c.bf16 %v27_v38, %v26_v35  ;;  %s628_s8 = sshll.u32 %s797_s2, 4  ;;  %s629_s8 = int_to_ptr.vmem [resolvable:$true] %s628_s8 }
   0x8   :  { %v856_v11 = vsub.s32 0, %v853_v10  ;;  %vm873_vm2 = vcmp.le.s32.totalorder %v120_v20, %v853_v10  ;;  %v294_v4 = vsub.s32 2, %v853_v10  ;;  %s770_s9 = scalar_lea.vmem %s629_s8, 256  ;;  %p775_p1 = scmp.lt.s32.totalorder %s629_s8, %s629_s8 }
   0x9   :  { %733 = vmatpush3.bf16.msra.mxu0 %v730_v6  ;;  %p771_p0 = scmp.ne.s32.totalorder %s629_s8, %s770_s9  ;;  %p776_p2 = scmp.lt.s32.totalorder %s770_s9, %s770_s9 }
   0xa   :  { %v32_v13 = vrot.slane %v861_v12, %v856_v11  ;;  %734 = vmatprep.subr.bf16.mxu0 %v796_v36 }
   0xb   :  { %p777_p3 = por %p776_p2, %p775_p1 }
   0xc   :  { %682 = vmatmul.mubr.msk.f32.vlgmr.msra.gmra.mrb[0].mxu0 %vm33_vm0, %v844_v7 }
   0xd   :  { %702 = vmatprep.mubr.msk.f32.mxu0 %vm795_vm1, %v794_v8  ;;  %736 = vmatpush3.bf16.msra.mxu0 %v735_v37  ;;  %p778_p4 = pnand %p777_p3, %p771_p0 }
   0xe   :  { %737 = vmatprep.subr.bf16.mxu0 %v796_v36 }
  0x11   :  { %739 = vmatpush3.bf16.msra.mxu0 %v738_v39 }
  0x12   :  { %740 = vmatprep.subr.bf16.mxu0 %v796_v36 }
  0xdf   :  { %v683_v14 = vpop.f32.mrb[0].mxu0 }
  0xe0   :  { %v112_v15 = vadd.f32 %v683_v14, %v32_v13  ;;  %v106_v16 = vpop.f32.mrb[1].mxu0 }
  0xe1   :  { %v107_v17 = vadd.f32 %v106_v16, %v32_v13 }
  0xe3   :  { %752 = vtanh.f32 %v107_v17 }
  0xed   :  { %v753_v18 = vpop.eup %752 }
  0xee   :  { %685 = vmatpush3.xpose.msk.msra.mxu1 %vm33_vm0, %v753_v18 }
  0xef   :  { %689 = vmatprep.subr.mxu1 %v794_v8 }
  0xf1   :  { %687 = vmatmul.mubr.msk.f32.vlgmr.msra.gmra.mrb[0].mxu1 %vm33_vm0, %v123_v19 }
  0xf2   :  { %690 = vmatpush3.msra.mxu1 %v18_v5  ;;  %691 = vmatprep.mubr.msk.f32.mxu1 %vm795_vm1, %v794_v8  ;;  %v295_v5 = vrot.slane %v861_v12, %v294_v4 }
  0xf3   :  { %705 = vmatprep.subr.mxu1 %v794_v8 }
 0x1c4   :  { %v195_v21 = vpop.f32.mrb[0].mxu1 }
 0x1c5   :  { %v202_v23 = vrot.slane %v195_v21, %v856_v11  ;;  %v688_v24 = vpop.f32.mrb[1].mxu1 }
 0x1c7   :  { %v203_v25 = vsel %vm873_vm2, %v202_v23, -1e+30 }
 0x1c8   :  { %v205_v26 = vsel %vm204_vm3, %v203_v25, -inf }
 0x1c9   :  { %206 = vmax.xlane.f32.xlu0 %v205_v26 }
 0x256   :  { %v207_v27 = vpop.xlane.xlu0 %206 }
 0x257   :  { %v208_v28 = vsub.f32 %v203_v25, %v207_v27 }
 0x259   :  { %v209_v29 = vmul.f32 1.442695, %v208_v28 }
 0x25b   :  { %754 = vpow2.f32 %v209_v29 }
 0x265   :  { %v755_v30 = vpop.eup %754 }
 0x266   :  { %v211_v31 = vsel %vm873_vm2, %v755_v30, 0.0 }
 0x267   :  { %v212_v32 = vsel %vm204_vm3, %v211_v31, 0.0 }
 0x268   :  { %213 = vadd.xlane.f32.xlu0 %v212_v32 }
 0x2f5   :  { %v214_v40 = vpop.xlane.xlu0 %213 }
 0x2f6   :  { %756 = vlog2.f32 %v214_v40 }
 0x2f7   :  { %758 = vtanh.f32 %v112_v15 }
 0x300   :  { %v757_v41 = vpop.eup %756 }
 0x301   :  { %v216_v42 = vmul.f32 0.6931472, %v757_v41  ;;  %v759_v45 = vpop.eup %758 }
 0x303   :  { %v217_v43 = vsub.f32 %v208_v28, %v216_v42 }
 0x305   :  { %v218_v44 = vsel %vm873_vm2, %v217_v43, 0.0 }
 0x306   :  { %692 = vmatmul.mubr.msk.f32.vlgmr.msra.gmra.mrb[2].mxu1 %vm204_vm3, %v218_v44 }
 0x307   :  { %706 = vmatpush3.xpose.msk.msra.mxu1 %vm33_vm0, %v759_v45  ;;  %707 = vmatprep.mubr.msk.f32.mxu1 %vm795_vm1, %v794_v8 }
 0x308   :  { %710 = vmatprep.subr.mxu1 %v794_v8 }
 0x30a   :  { %708 = vmatmul.mubr.msk.f32.vlgmr.msra.gmra.mrb[4].mxu1 %vm33_vm0, %v123_v19 }
 0x30b   :  { %711 = vmatpush3.msra.mxu1 %v844_v7  ;;  %712 = vmatprep.mubr.msk.f32.mxu1 %vm795_vm1, %v794_v8 }
 0x3d9   :  { %v288_v46 = vpop.f32.mrb[2].mxu1 }
 0x3da   :  { %v693_v47 = vpop.f32.mrb[3].mxu1  ;;  %703 = vmatmul.mubr.msk.f32.vlgmr.msra.gmra.mrb[2].mxu0 %vm33_vm0, %v288_v46 }
 0x3db   :  { %742 = vmatpush3.bf16.msra.mxu0 %v735_v37  ;;  %723 = vmatprep.mubr.msk.f32.mxu0 %vm795_vm1, %v794_v8 }
 0x3dc   :  { %743 = vmatprep.subr.bf16.mxu0 %v796_v36 }
 0x3dd   :  { %v438_v48 = vpop.f32.mrb[4].mxu1 }
 0x3de   :  { %v445_v49 = vrot.slane %v438_v48, %v856_v11  ;;  %v709_v50 = vpop.f32.mrb[5].mxu1 }
 0x3df   :  { %745 = vmatpush3.bf16.msra.mxu0 %v738_v39 }
 0x3e0   :  { %v446_v51 = vsel %vm873_vm2, %v445_v49, -1e+30 }
 0x3e1   :  { %v447_v52 = vsel %vm204_vm3, %v446_v51, -inf }
 0x3e2   :  { %448 = vmax.xlane.f32.xlu1 %v447_v52 }
 0x46f   :  { %v449_v53 = vpop.xlane.xlu1 %448 }
 0x470   :  { %v450_v54 = vsub.f32 %v446_v51, %v449_v53 }
 0x472   :  { %v451_v55 = vmul.f32 1.442695, %v450_v54 }
 0x474   :  { %760 = vpow2.f32 %v451_v55 }
 0x47e   :  { %v761_v56 = vpop.eup %760 }
 0x47f   :  { %v453_v57 = vsel %vm873_vm2, %v761_v56, 0.0 }
 0x480   :  { %v454_v58 = vsel %vm204_vm3, %v453_v57, 0.0 }
 0x481   :  { %455 = vadd.xlane.f32.xlu1 %v454_v58 }
 0x4ad   :  { %v365_v59 = vpop.f32.mrb[2].mxu0 }
 0x4ae   :  { %v704_v60 = vpop.f32.mrb[3].mxu0  ;;  %v366_v7 = vadd.f32 %v365_v59, %v295_v5 }
 0x50e   :  { %v456_v61 = vpop.xlane.xlu1 %455 }
 0x50f   :  { %762 = vlog2.f32 %v456_v61 }
 0x519   :  { %v763_v62 = vpop.eup %762 }
 0x51a   :  { %v458_v63 = vmul.f32 0.6931472, %v763_v62 }
 0x51c   :  { %v459_v0 = vsub.f32 %v450_v54, %v458_v63 }
 0x51e   :  { %v460_v1 = vsel %vm873_vm2, %v459_v0, 0.0 }
 0x51f   :  { %713 = vmatmul.mubr.msk.f32.vlgmr.msra.gmra.mrb[6].mxu1 %vm204_vm3, %v460_v1 }
 0x5f2   :  { %v530_v2 = vpop.f32.mrb[6].mxu1 }
 0x5f3   :  { %v714_v3 = vpop.f32.mrb[7].mxu1  ;;  %724 = vmatmul.mubr.msk.f32.vlgmr.msra.gmra.mrb[4].mxu0 %vm33_vm0, %v530_v2 }
 0x6c6   :  { %v603_v6 = vpop.f32.mrb[4].mxu0 }
 0x6c7   :  { %v604_v8 = vadd.f32 %v603_v6, %v295_v5  ;;  %v725_v9 = vpop.f32.mrb[5].mxu0 }
 0x6c9   :  { %v607_v11 = vmax.f32 %v366_v7, %v604_v8 }
 0x6cb   :  { %v608_v13 = vsub.f32 %v366_v7, %v607_v11  ;;  %v611_v14 = vsub.f32 %v604_v8, %v607_v11 }
 0x6cd   :  { %v609_v15 = vmul.f32 1.442695, %v608_v13  ;;  %v612_v16 = vmul.f32 1.442695, %v611_v14 }
 0x6cf   :  { %764 = vpow2.f32 %v609_v15 }
 0x6d0   :  { %766 = vpow2.f32 %v612_v16 }
 0x6d9   :  { %v765_v17 = vpop.eup %764 }
 0x6da   :  { %v767_v18 = vpop.eup %766 }
 0x6db   :  { %v614_v19 = vadd.f32 %v767_v18, %v765_v17 }
 0x6dd   :  { %768 = vlog2.f32 %v614_v19 }
 0x6e7   :  { %v769_v20 = vpop.eup %768 }
 0x6e8   :  { %v616_v21 = vmul.f32 0.6931472, %v769_v20 }
 0x6ea   :  { %v617_v10 = vadd.f32 %v616_v21, %v607_v11 }
 0x6ec   :  { %v618_v12 = vsub.f32 %v366_v7, %v617_v10  ;;  %v619_v22 = vsub.f32 %v604_v8, %v617_v10 }
 0x6ee   :  { %622 = vst.msk [vmem:[#allocation2 + $0x8] sm:$0xff] %vm620_vm4, %v619_v22  ;;  %621 = vst.msk [vmem:[#allocation2] sm:$0xff] %vm620_vm4, %v618_v12 }
 0x6ef   :  { %781 = shalt.err (!%p778_p4)
}
 0x6f0   :  { %s782_s12 = scalar_lea.hbm %s939_s4, 256 }
 0x6f1   :  { %p783_p5 = scmp.ne.s32.totalorder %s939_s4, %s782_s12  ;;  %p786_p6 = scmp.lt.u32.totalorder %s782_s12, %s939_s4 }
 0x6f3   :  { %p788_p7 = pnand %p786_p6, %p783_p5 }
 0x6f5   :  { %791 = shalt.err (!%p788_p7)
}
 0x6f6   :  { %s798_s17 = smov 128   ;;  %s799_s18 = smov 8  }
 0x6f7   :  { %634 = dma.vmem_to_hbm [thread:$0]  %s629_s8, 256, %s939_s4, [#allocation3], %s798_s17, %s798_s17, %s799_s18  }
 0x6f8   :  { %792 = dma.done.wait [#allocation3], 256  }
 0x6f9   :  { %793 = vsyncadd [#allocation3], 4294967040 }
 0x6fa   :  { %638 = vsyncpa [#allocation3], 1 }

</bundles_post_ra>
